<compile_context>
chip_gen: v7x
topology: tpu7x:2x2x1
jax: 0.10.0
libtpu: 0.0.40
codegen_flags: <defaults>
</compile_context>

<pallas_src>
import functools

import jax
import jax.numpy as jnp
from jax.experimental import pallas as pl
from jax.experimental.pallas import tpu as pltpu

LN_EPS = 1e-5
BN_EPS = 1e-5
MASK_P = 0.1            # x[rand < 0.1] = 0

D_IN = 24               # ask_dim (modality = [])
D_MID = 2 * D_IN        # RUnit hidden = 48
D_H = 32                # final_h
N_CLS = 4               # num_classes

# Packed-parameter row offsets: weights are (out, in), left-aligned in columns.
OFF_W1 = 0
OFF_W2 = OFF_W1 + D_MID          # 48
OFF_W3 = OFF_W2 + D_IN           # 72
OFF_W4 = OFF_W3 + D_H            # 104
PACK_ROWS = OFF_W4 + N_CLS       # 108
PACK_COLS = D_MID                # 48 (max in_dim)


def _ln_cols(v, red_row):
    """LayerNorm (no affine) over the feature axis (axis 0); samples on lanes.

    Mean and E[v^2] are computed with a (1, D) x (D, TB) MXU matmul instead of
    XLU sublane reductions; var = E[v^2] - mu^2 (clamped)."""
    mu = jnp.dot(red_row, v, preferred_element_type=jnp.float32)        # (1, TB)
    ev2 = jnp.dot(red_row, v * v, preferred_element_type=jnp.float32)   # (1, TB)
    var = jnp.maximum(ev2 - mu * mu, 0.0)
    return (v - mu) * jax.lax.rsqrt(var + LN_EPS)


def fc_fused_kernel(meta_ref,                       # scalar prefetch (SMEM): [n_valid]
                    xt_ref, mbits_ref, wpack_ref, bpack_ref,
                    logits_ref, loss_ref,
                    z_buf, mu_acc, ss_acc, *, n_tiles):
    i = pl.program_id(0)
    tb = xt_ref.shape[1]
    n_valid = meta_ref[0]

    @pl.when(i == 0)
    def _init():
        mu_acc[...] = jnp.zeros_like(mu_acc)
        ss_acc[...] = jnp.zeros_like(ss_acc)
        loss_ref[...] = jnp.zeros_like(loss_ref)

    temp = xt_ref[...]                               # (24, TB) pre-mask input

    # ---- random feature mask x[rand < 0.1] = 0 ----
    # Bernoulli draws arrive packed: one int32 per sample, bit r set -> zero
    # feature r.  4 bytes/sample of HBM traffic instead of a second f32 copy.
    bits = mbits_ref[...]                            # (1, TB) int32
    row = jax.lax.broadcasted_iota(jnp.int32, (D_IN, tb), 0)
    hit = jnp.bitwise_and(jnp.right_shift(bits, row), 1)
    xm = jnp.where(hit == 0, temp, 0.0)

    # ---- packed weights (resident in VMEM across the whole grid) ----
    w1 = wpack_ref[pl.ds(OFF_W1, D_MID), pl.ds(0, D_IN)]    # (48, 24)
    b1 = bpack_ref[pl.ds(OFF_W1, D_MID), :]                 # (48, 1)
    w2 = wpack_ref[pl.ds(OFF_W2, D_IN), pl.ds(0, D_MID)]    # (24, 48)
    b2 = bpack_ref[pl.ds(OFF_W2, D_IN), :]                  # (24, 1)
    w3 = wpack_ref[pl.ds(OFF_W3, D_H), pl.ds(0, D_IN)]      # (32, 24)
    b3 = bpack_ref[pl.ds(OFF_W3, D_H), :]                   # (32, 1)

    # ---- RUnit: Linear -> ReLU -> Linear ----
    h = jnp.maximum(jnp.dot(w1, xm, preferred_element_type=jnp.float32) + b1, 0.0)
    y = jnp.dot(w2, h, preferred_element_type=jnp.float32) + b2          # (24, TB)

    # ---- validity column for padded batch columns (masking via MXU matmuls) ----
    col = jax.lax.broadcasted_iota(jnp.int32, (tb, 1), 0) + i * tb
    valid_col = (col < n_valid).astype(jnp.float32)                      # (TB, 1)

    # ---- reconstruction loss partial: sum |LN(y) - LN(temp)| over valid cols ----
    red_row = jnp.full((1, D_IN), 1.0 / D_IN, jnp.float32)
    diff = jnp.abs(_ln_cols(y, red_row) - _ln_cols(temp, red_row))       # (24, TB)
    loss_ref[...] = loss_ref[...] + jnp.sum(
        jnp.dot(diff, valid_col, preferred_element_type=jnp.float32), keepdims=True)

    # ---- fc head up to BN input: Linear -> Dropout(identity) -> ReLU ----
    # TODO(synk): Dropout is identity here (eval semantics), see header.
    z = jnp.maximum(jnp.dot(w3, y, preferred_element_type=jnp.float32) + b3, 0.0)

    # Stash this tile's z in the full-batch VMEM scratch (no HBM round trip).
    z_buf[i] = z                                                         # (32, TB)

    # ---- BatchNorm statistics: masked sum / sum-of-squares via MXU ----
    mu_acc[...] = mu_acc[...] + jnp.dot(z, valid_col,
                                        preferred_element_type=jnp.float32)
    ss_acc[...] = ss_acc[...] + jnp.dot(z * z, valid_col,
                                        preferred_element_type=jnp.float32)

    # ---- last tile: finalize stats, normalize z from VMEM, final Linear ----
    @pl.when(i == n_tiles - 1)
    def _finalize():
        n = n_valid.astype(jnp.float32)
        mean = mu_acc[...] / n                                  # (32, 1)
        var = jnp.maximum(ss_acc[...] / n - mean * mean, 0.0)   # biased, clamped
        rstd = jax.lax.rsqrt(var + BN_EPS)                      # (32, 1)

        w4 = wpack_ref[pl.ds(OFF_W4, N_CLS), pl.ds(0, D_H)]     # (4, 32)
        b4 = bpack_ref[pl.ds(OFF_W4, N_CLS), :]                 # (4, 1)

        # Static unrolled loop over the VMEM-resident z tiles; logits output is
        # resident (constant index_map) and written back to HBM once at the end.
        for t in range(n_tiles):
            zb = (z_buf[t] - mean) * rstd                       # (32, TB)
            logits_ref[:, t * tb:(t + 1) * tb] = (
                jnp.dot(w4, zb, preferred_element_type=jnp.float32) + b4)

        loss_ref[...] = loss_ref[...] / (n * jnp.float32(D_IN))


def pack_params(params):
    """Pack the 4 (out,in) weights / biases into single resident VMEM buffers."""
    wpack = jnp.zeros((PACK_ROWS, PACK_COLS), jnp.float32)
    bpack = jnp.zeros((PACK_ROWS, 1), jnp.float32)
    layout = (("1", OFF_W1, D_MID, D_IN), ("2", OFF_W2, D_IN, D_MID),
              ("3", OFF_W3, D_H, D_IN), ("4", OFF_W4, N_CLS, D_H))
    for tag, off, rows, cols in layout:
        wpack = wpack.at[off:off + rows, :cols].set(params["w" + tag].astype(jnp.float32))
        bpack = bpack.at[off:off + rows, 0].set(params["b" + tag].astype(jnp.float32))
    return wpack, bpack


def feature_mask(seed, batch):
    """torch.rand(x.shape) < 0.1 feature mask, drawn host-side with jax.random.

    Grid-invariant and works in interpret mode (in-kernel pltpu.prng_* has no
    CPU/interpret lowering, which broke the previous version)."""
    u = jax.random.uniform(jax.random.PRNGKey(seed), (batch, D_IN), jnp.float32)
    return u < jnp.float32(MASK_P)


def _round_up(a, m):
    return (a + m - 1) // m * m


def fc_forward(x, params, *, seed=0, tile_b=2048):
    """x: (B, 24) f32.  Returns (logits (B, 4), rloss scalar)."""
    B, d = x.shape
    assert d == D_IN
    tile_b = max(128, _round_up(int(tile_b), 128))   # lane-dense tiles
    bp = _round_up(B, 128)
    if bp <= tile_b:
        tb, n_tiles = bp, 1
    else:
        tb = tile_b
        bp = _round_up(B, tb)
        n_tiles = bp // tb
    # Fused design keeps the full-batch z in VMEM (128 bytes / sample).
    # TODO(synk): add a streamed / two-pass fallback for very large batches.
    assert D_H * bp * 4 <= 12 * 1024 * 1024, "batch too large for fused VMEM z scratch"

    xt = jnp.transpose(x.astype(jnp.float32))                    # (24, B) batch-on-lanes
    if bp != B:
        xt = jnp.pad(xt, ((0, 0), (0, bp - B)))

    # Pack the Bernoulli(0.1) mask into one int32 bit-field per sample.
    mask = feature_mask(seed, B)                                  # (B, 24) bool
    bitw = jnp.left_shift(jnp.int32(1), jnp.arange(D_IN, dtype=jnp.int32))
    mbits = jnp.sum(jnp.where(mask, bitw, 0), axis=1, dtype=jnp.int32)   # (B,)
    mbits = jnp.pad(mbits, (0, bp - B)).reshape(1, bp)

    wpack, bpack = pack_params(params)
    meta = jnp.array([B], dtype=jnp.int32)                        # [valid batch]

    kernel = functools.partial(fc_fused_kernel, n_tiles=n_tiles)

    logits_t, loss = pl.pallas_call(
        kernel,
        out_shape=(jax.ShapeDtypeStruct((N_CLS, bp), jnp.float32),
                   jax.ShapeDtypeStruct((1, 1), jnp.float32)),
        grid_spec=pltpu.PrefetchScalarGridSpec(
            num_scalar_prefetch=1,
            grid=(n_tiles,),
            in_specs=[
                pl.BlockSpec((D_IN, tb), lambda i, meta: (0, i)),
                pl.BlockSpec((1, tb), lambda i, meta: (0, i)),
                pl.BlockSpec((PACK_ROWS, PACK_COLS), lambda i, meta: (0, 0)),
                pl.BlockSpec((PACK_ROWS, 1), lambda i, meta: (0, 0)),
            ],
            out_specs=(
                pl.BlockSpec((N_CLS, bp), lambda i, meta: (0, 0)),   # resident logits
                pl.BlockSpec((1, 1), lambda i, meta: (0, 0)),        # resident loss acc
            ),
            scratch_shapes=[
                pltpu.VMEM((n_tiles, D_H, tb), jnp.float32),   # full-batch z (no HBM trip)
                pltpu.VMEM((D_H, 1), jnp.float32),             # BN sum
                pltpu.VMEM((D_H, 1), jnp.float32),             # BN sum of squares
            ],
        ),
        compiler_params=pltpu.CompilerParams(
            # Accumulators + resident z/logits are carried across tiles -> "arbitrary".
            # TODO(synk): v7x could split tiles across its 2 TensorCores with
            # per-core partial stats and a tiny combine epilogue.
            dimension_semantics=("arbitrary",),
            vmem_limit_bytes=32 * 1024 * 1024),
    )(meta, xt, mbits, wpack, bpack)

    logits = jnp.transpose(logits_t[:, :B])                       # (B, 4)
    return logits, loss[0, 0]


def fc_reference(x, params, mask):
    """Pure-JAX reference (same mask) for correctness checking."""
    xf = x.astype(jnp.float32)
    xm = jnp.where(mask, 0.0, xf)
    h = jnp.maximum(xm @ params["w1"].T + params["b1"], 0.0)
    y = h @ params["w2"].T + params["b2"]

    def ln(v):
        mu = jnp.mean(v, axis=-1, keepdims=True)
        var = jnp.mean((v - mu) ** 2, axis=-1, keepdims=True)
        return (v - mu) / jnp.sqrt(var + LN_EPS)

    rloss = jnp.mean(jnp.abs(ln(y) - ln(xf)))
    z = jnp.maximum(y @ params["w3"].T + params["b3"], 0.0)
    mu = jnp.mean(z, axis=0)
    var = jnp.mean((z - mu) ** 2, axis=0)
    zb = (z - mu) / jnp.sqrt(var + BN_EPS)
    logits = zb @ params["w4"].T + params["b4"]
    return logits, rloss


def init_params(key):
    """PyTorch-style Linear params: weight (out_dim, in_dim), bias (out_dim,)."""
    shapes = {
        "w1": (D_MID, D_IN), "b1": (D_MID,),
        "w2": (D_IN, D_MID), "b2": (D_IN,),
        "w3": (D_H, D_IN),  "b3": (D_H,),
        "w4": (N_CLS, D_H), "b4": (N_CLS,),
    }
    fan_in = {"1": D_IN, "2": D_MID, "3": D_IN, "4": D_H}
    params = {}
    for name, shape in shapes.items():
        key, sub = jax.random.split(key)
        bound = float(fan_in[name[1]]) ** -0.5
        params[name] = jax.random.uniform(sub, shape, jnp.float32,
                                          minval=-bound, maxval=bound)
    return params


if __name__ == "__main__":
    B = 8
    key = jax.random.PRNGKey(0)
    k_x, k_p = jax.random.split(key)

    x1 = jax.random.normal(k_x, (B, D_IN), jnp.float32)
    params = init_params(k_p)

    logits, rloss = fc_forward(x1, params, seed=0)
    jax.block_until_ready((logits, rloss))
    assert logits.shape == (B, N_CLS) and logits.dtype == jnp.float32
    assert rloss.shape == () and bool(jnp.isfinite(rloss))
    assert bool(jnp.all(jnp.isfinite(logits)))

    # Loose-tolerance check vs a pure-JAX reference (same mask); generous bound
    # covers TPU MXU default-precision matmuls.
    ref_logits, ref_loss = fc_reference(x1, params, feature_mask(0, B))
    assert float(jnp.max(jnp.abs(logits - ref_logits))) < 5e-2
    assert abs(float(rloss) - float(ref_loss)) < 5e-2

    # Exercise the multi-tile accumulate-then-finalize path with padded columns.
    B2 = 200
    x2 = jax.random.normal(jax.random.PRNGKey(1), (B2, D_IN), jnp.float32)
    logits2, rloss2 = fc_forward(x2, params, seed=3, tile_b=128)
    jax.block_until_ready((logits2, rloss2))
    assert logits2.shape == (B2, N_CLS)
    assert bool(jnp.isfinite(rloss2)) and bool(jnp.all(jnp.isfinite(logits2)))
    ref_logits2, ref_loss2 = fc_reference(x2, params, feature_mask(3, B2))
    assert float(jnp.max(jnp.abs(logits2 - ref_logits2))) < 5e-2
    assert abs(float(rloss2) - float(ref_loss2)) < 5e-2

    print("KERNEL_OK")
</pallas_src>

<mosaic_0001>
module attributes {stable_mosaic.version = 11 : i64} {
  func.func @fc_fused_kernel(%arg0: i32, %arg1: memref<1xi32, #tpu.memory_space<smem>>, %arg2: memref<24x128xf32, #tpu.memory_space<vmem>>, %arg3: memref<1x128xi32, #tpu.memory_space<vmem>>, %arg4: memref<108x48xf32, #tpu.memory_space<vmem>>, %arg5: memref<108x1xf32, #tpu.memory_space<vmem>>, %arg6: memref<4x128xf32, #tpu.memory_space<vmem>>, %arg7: memref<1x1xf32, #tpu.memory_space<vmem>>, %arg8: memref<1x32x128xf32, #tpu.memory_space<vmem>>, %arg9: memref<32x1xf32, #tpu.memory_space<vmem>>, %arg10: memref<32x1xf32, #tpu.memory_space<vmem>>) attributes {dimension_semantics = [#tpu.dimension_semantics<arbitrary>], iteration_bounds = array<i64: 1>, scalar_prefetch = 1 : i64, scratch_operands = 3 : i64, tpu.core_type = #tpu.core_type<tc>, window_params = [{transform_indices = @transform_0, window_bounds = array<i64: 24, 128>}, {transform_indices = @transform_1, window_bounds = array<i64: 1, 128>}, {pipeline_mode = #tpu.pipeline_mode<synchronous>, transform_indices = @transform_2, window_bounds = array<i64: 108, 48>}, {pipeline_mode = #tpu.pipeline_mode<synchronous>, transform_indices = @transform_3, window_bounds = array<i64: 108, 1>}, {pipeline_mode = #tpu.pipeline_mode<synchronous>, transform_indices = @transform_4, window_bounds = array<i64: 4, 128>}, {pipeline_mode = #tpu.pipeline_mode<synchronous>, transform_indices = @transform_5, window_bounds = array<i64: 1, 1>}]} {
    %c0 = arith.constant 0 : index
    %0 = memref.load %arg1[%c0] : memref<1xi32, #tpu.memory_space<smem>>
    %c0_i32 = arith.constant 0 : i32
    %1 = arith.cmpi eq, %arg0, %c0_i32 : i32
    %2 = arith.extui %1 : i1 to i32
    %c0_i32_0 = arith.constant 0 : i32
    %3 = arith.cmpi ne, %2, %c0_i32_0 : i32
    scf.if %3 {
      %cst_50 = arith.constant 0.000000e+00 : f32
      %98 = vector.broadcast %cst_50 : f32 to vector<32x1xf32>
      %c0_51 = arith.constant 0 : index
      %c0_52 = arith.constant 0 : index
      %99 = vector.load %arg9[%c0_51, %c0_52] : memref<32x1xf32, #tpu.memory_space<vmem>>, vector<32x1xf32>
      tpu.vector_store %arg9[%c0_51, %c0_52], %98 {strides = array<i32>} : memref<32x1xf32, #tpu.memory_space<vmem>>, vector<32x1xf32>,
      %cst_53 = arith.constant 0.000000e+00 : f32
      %100 = vector.broadcast %cst_53 : f32 to vector<32x1xf32>
      %c0_54 = arith.constant 0 : index
      %c0_55 = arith.constant 0 : index
      %101 = vector.load %arg10[%c0_54, %c0_55] : memref<32x1xf32, #tpu.memory_space<vmem>>, vector<32x1xf32>
      tpu.vector_store %arg10[%c0_54, %c0_55], %100 {strides = array<i32>} : memref<32x1xf32, #tpu.memory_space<vmem>>, vector<32x1xf32>,
      %cst_56 = arith.constant 0.000000e+00 : f32
      %102 = vector.broadcast %cst_56 : f32 to vector<1x1xf32>
      %c0_57 = arith.constant 0 : index
      %c0_58 = arith.constant 0 : index
      %103 = vector.load %arg7[%c0_57, %c0_58] : memref<1x1xf32, #tpu.memory_space<vmem>>, vector<1x1xf32>
      tpu.vector_store %arg7[%c0_57, %c0_58], %102 {strides = array<i32>} : memref<1x1xf32, #tpu.memory_space<vmem>>, vector<1x1xf32>,
    } else {
    }
    %c0_1 = arith.constant 0 : index
    %c0_2 = arith.constant 0 : index
    %4 = vector.load %arg2[%c0_1, %c0_2] : memref<24x128xf32, #tpu.memory_space<vmem>>, vector<24x128xf32>
    %c0_3 = arith.constant 0 : index
    %c0_4 = arith.constant 0 : index
    %5 = vector.load %arg3[%c0_3, %c0_4] : memref<1x128xi32, #tpu.memory_space<vmem>>, vector<1x128xi32>
    %6 = tpu.iota {dimensions = array<i32: 0>} : vector<24x128xi32>
    %7 = vector.broadcast %5 : vector<1x128xi32> to vector<24x128xi32>
    %8 = arith.shrsi %7, %6 : vector<24x128xi32>
    %c1_i32 = arith.constant 1 : i32
    %9 = vector.broadcast %c1_i32 : i32 to vector<24x128xi32>
    %10 = arith.andi %8, %9 : vector<24x128xi32>
    %c0_i32_5 = arith.constant 0 : i32
    %11 = vector.broadcast %c0_i32_5 : i32 to vector<24x128xi32>
    %12 = arith.cmpi eq, %10, %11 : vector<24x128xi32>
    %cst = arith.constant 0.000000e+00 : f32
    %13 = vector.broadcast %cst : f32 to vector<24x128xf32>
    %14 = arith.select %12, %4, %13 : vector<24x128xi1>, vector<24x128xf32>
    %c0_6 = arith.constant 0 : index
    %c0_7 = arith.constant 0 : index
    %15 = vector.load %arg4[%c0_6, %c0_7] : memref<108x48xf32, #tpu.memory_space<vmem>>, vector<48x24xf32>
    %c0_8 = arith.constant 0 : index
    %c0_9 = arith.constant 0 : index
    %16 = vector.load %arg5[%c0_8, %c0_9] : memref<108x1xf32, #tpu.memory_space<vmem>>, vector<48x1xf32>
    %c48 = arith.constant 48 : index
    %c0_10 = arith.constant 0 : index
    %17 = vector.load %arg4[%c48, %c0_10] : memref<108x48xf32, #tpu.memory_space<vmem>>, vector<24x48xf32>
    %c48_11 = arith.constant 48 : index
    %c0_12 = arith.constant 0 : index
    %18 = vector.load %arg5[%c48_11, %c0_12] : memref<108x1xf32, #tpu.memory_space<vmem>>, vector<24x1xf32>
    %c72 = arith.constant 72 : index
    %c0_13 = arith.constant 0 : index
    %19 = vector.load %arg4[%c72, %c0_13] : memref<108x48xf32, #tpu.memory_space<vmem>>, vector<32x24xf32>
    %c72_14 = arith.constant 72 : index
    %c0_15 = arith.constant 0 : index
    %20 = vector.load %arg5[%c72_14, %c0_15] : memref<108x1xf32, #tpu.memory_space<vmem>>, vector<32x1xf32>
    %cst_16 = arith.constant dense<0.000000e+00> : vector<48x128xf32>
    %21 = tpu.matmul %15, %14, %cst_16 {dimension_numbers = #tpu.dot_dimension_numbers<[1], [0], [0], [1], [0, 0, 1, 1], [], []>} : vector<48x24xf32>, vector<24x128xf32>, vector<48x128xf32> -> vector<48x128xf32>
    %22 = vector.broadcast %16 : vector<48x1xf32> to vector<48x128xf32>
    %23 = arith.addf %21, %22 : vector<48x128xf32>
    %cst_17 = arith.constant 0.000000e+00 : f32
    %24 = vector.broadcast %cst_17 : f32 to vector<48x128xf32>
    %25 = arith.maximumf %23, %24 : vector<48x128xf32>
    %cst_18 = arith.constant dense<0.000000e+00> : vector<24x128xf32>
    %26 = tpu.matmul %17, %25, %cst_18 {dimension_numbers = #tpu.dot_dimension_numbers<[1], [0], [0], [1], [0, 0, 1, 1], [], []>} : vector<24x48xf32>, vector<48x128xf32>, vector<24x128xf32> -> vector<24x128xf32>
    %27 = vector.broadcast %18 : vector<24x1xf32> to vector<24x128xf32>
    %28 = arith.addf %26, %27 : vector<24x128xf32>
    %29 = tpu.iota {dimensions = array<i32: 0>} : vector<128x1xi32>
    %c128_i32 = arith.constant 128 : i32
    %30 = arith.muli %arg0, %c128_i32 : i32
    %31 = vector.broadcast %30 : i32 to vector<128x1xi32>
    %32 = arith.addi %29, %31 : vector<128x1xi32>
    %33 = vector.broadcast %0 : i32 to vector<128x1xi32>
    %34 = arith.cmpi slt, %32, %33 : vector<128x1xi32>
    %35 = arith.extui %34 : vector<128x1xi1> to vector<128x1xi32>
    %36 = arith.sitofp %35 : vector<128x1xi32> to vector<128x1xf32>
    %cst_19 = arith.constant 0.0416666679 : f32
    %37 = vector.broadcast %cst_19 : f32 to vector<1x24xf32>
    %cst_20 = arith.constant dense<0.000000e+00> : vector<1x128xf32>
    %38 = tpu.matmul %37, %28, %cst_20 {dimension_numbers = #tpu.dot_dimension_numbers<[1], [0], [0], [1], [0, 0, 1, 1], [], []>} : vector<1x24xf32>, vector<24x128xf32>, vector<1x128xf32> -> vector<1x128xf32>
    %39 = arith.mulf %28, %28 : vector<24x128xf32>
    %cst_21 = arith.constant dense<0.000000e+00> : vector<1x128xf32>
    %40 = tpu.matmul %37, %39, %cst_21 {dimension_numbers = #tpu.dot_dimension_numbers<[1], [0], [0], [1], [0, 0, 1, 1], [], []>} : vector<1x24xf32>, vector<24x128xf32>, vector<1x128xf32> -> vector<1x128xf32>
    %41 = arith.mulf %38, %38 : vector<1x128xf32>
    %42 = arith.subf %40, %41 : vector<1x128xf32>
    %cst_22 = arith.constant 0.000000e+00 : f32
    %43 = vector.broadcast %cst_22 : f32 to vector<1x128xf32>
    %44 = arith.maximumf %42, %43 : vector<1x128xf32>
    %45 = vector.broadcast %38 : vector<1x128xf32> to vector<24x128xf32>
    %46 = arith.subf %28, %45 : vector<24x128xf32>
    %cst_23 = arith.constant 9.99999974E-6 : f32
    %47 = vector.broadcast %cst_23 : f32 to vector<1x128xf32>
    %48 = arith.addf %44, %47 : vector<1x128xf32>
    %49 = math.rsqrt %48 : vector<1x128xf32>
    %50 = vector.broadcast %49 : vector<1x128xf32> to vector<24x128xf32>
    %51 = arith.mulf %46, %50 : vector<24x128xf32>
    %cst_24 = arith.constant dense<0.000000e+00> : vector<1x128xf32>
    %52 = tpu.matmul %37, %4, %cst_24 {dimension_numbers = #tpu.dot_dimension_numbers<[1], [0], [0], [1], [0, 0, 1, 1], [], []>} : vector<1x24xf32>, vector<24x128xf32>, vector<1x128xf32> -> vector<1x128xf32>
    %53 = arith.mulf %4, %4 : vector<24x128xf32>
    %cst_25 = arith.constant dense<0.000000e+00> : vector<1x128xf32>
    %54 = tpu.matmul %37, %53, %cst_25 {dimension_numbers = #tpu.dot_dimension_numbers<[1], [0], [0], [1], [0, 0, 1, 1], [], []>} : vector<1x24xf32>, vector<24x128xf32>, vector<1x128xf32> -> vector<1x128xf32>
    %55 = arith.mulf %52, %52 : vector<1x128xf32>
    %56 = arith.subf %54, %55 : vector<1x128xf32>
    %cst_26 = arith.constant 0.000000e+00 : f32
    %57 = vector.broadcast %cst_26 : f32 to vector<1x128xf32>
    %58 = arith.maximumf %56, %57 : vector<1x128xf32>
    %59 = vector.broadcast %52 : vector<1x128xf32> to vector<24x128xf32>
    %60 = arith.subf %4, %59 : vector<24x128xf32>
    %cst_27 = arith.constant 9.99999974E-6 : f32
    %61 = vector.broadcast %cst_27 : f32 to vector<1x128xf32>
    %62 = arith.addf %58, %61 : vector<1x128xf32>
    %63 = math.rsqrt %62 : vector<1x128xf32>
    %64 = vector.broadcast %63 : vector<1x128xf32> to vector<24x128xf32>
    %65 = arith.mulf %60, %64 : vector<24x128xf32>
    %66 = arith.subf %51, %65 : vector<24x128xf32>
    %67 = math.absf %66 : vector<24x128xf32>
    %c0_28 = arith.constant 0 : index
    %c0_29 = arith.constant 0 : index
    %68 = vector.load %arg7[%c0_28, %c0_29] : memref<1x1xf32, #tpu.memory_space<vmem>>, vector<1x1xf32>
    %cst_30 = arith.constant dense<0.000000e+00> : vector<24x1xf32>
    %69 = tpu.matmul %67, %36, %cst_30 {dimension_numbers = #tpu.dot_dimension_numbers<[1], [0], [0], [1], [0, 0, 1, 1], [], []>} : vector<24x128xf32>, vector<128x1xf32>, vector<24x1xf32> -> vector<24x1xf32>
    %70 = vector.shape_cast %69 : vector<24x1xf32> to vector<1x24x1xf32>
    %cst_31 = arith.constant dense<0.000000e+00> : vector<1xf32>
    %71 = vector.multi_reduction <add>, %70, %cst_31 [1, 2] : vector<1x24x1xf32> to vector<1xf32>
    %72 = vector.shape_cast %71 : vector<1xf32> to vector<1x1x1xf32>
    %73 = vector.extract %72[0, 0, 0] : f32 from vector<1x1x1xf32>
    %74 = vector.broadcast %73 : f32 to vector<1x1xf32>
    %75 = arith.addf %68, %74 : vector<1x1xf32>
    %c0_32 = arith.constant 0 : index
    %c0_33 = arith.constant 0 : index
    %76 = vector.load %arg7[%c0_32, %c0_33] : memref<1x1xf32, #tpu.memory_space<vmem>>, vector<1x1xf32>
    tpu.vector_store %arg7[%c0_32, %c0_33], %75 {strides = array<i32>} : memref<1x1xf32, #tpu.memory_space<vmem>>, vector<1x1xf32>,
    %cst_34 = arith.constant dense<0.000000e+00> : vector<32x128xf32>
    %77 = tpu.matmul %19, %28, %cst_34 {dimension_numbers = #tpu.dot_dimension_numbers<[1], [0], [0], [1], [0, 0, 1, 1], [], []>} : vector<32x24xf32>, vector<24x128xf32>, vector<32x128xf32> -> vector<32x128xf32>
    %78 = vector.broadcast %20 : vector<32x1xf32> to vector<32x128xf32>
    %79 = arith.addf %77, %78 : vector<32x128xf32>
    %cst_35 = arith.constant 0.000000e+00 : f32
    %80 = vector.broadcast %cst_35 : f32 to vector<32x128xf32>
    %81 = arith.maximumf %79, %80 : vector<32x128xf32>
    %82 = arith.index_cast %arg0 : i32 to index
    %c0_36 = arith.constant 0 : index
    %c0_37 = arith.constant 0 : index
    %83 = vector.load %arg8[%82, %c0_36, %c0_37] : memref<1x32x128xf32, #tpu.memory_space<vmem>>, vector<1x32x128xf32>
    %84 = vector.shape_cast %83 : vector<1x32x128xf32> to vector<32x128xf32>
    %85 = vector.shape_cast %81 : vector<32x128xf32> to vector<1x32x128xf32>
    tpu.vector_store %arg8[%82, %c0_36, %c0_37], %85 {strides = array<i32>} : memref<1x32x128xf32, #tpu.memory_space<vmem>>, vector<1x32x128xf32>,
    %c0_38 = arith.constant 0 : index
    %c0_39 = arith.constant 0 : index
    %86 = vector.load %arg9[%c0_38, %c0_39] : memref<32x1xf32, #tpu.memory_space<vmem>>, vector<32x1xf32>
    %cst_40 = arith.constant dense<0.000000e+00> : vector<32x1xf32>
    %87 = tpu.matmul %81, %36, %cst_40 {dimension_numbers = #tpu.dot_dimension_numbers<[1], [0], [0], [1], [0, 0, 1, 1], [], []>} : vector<32x128xf32>, vector<128x1xf32>, vector<32x1xf32> -> vector<32x1xf32>
    %88 = arith.addf %86, %87 : vector<32x1xf32>
    %c0_41 = arith.constant 0 : index
    %c0_42 = arith.constant 0 : index
    %89 = vector.load %arg9[%c0_41, %c0_42] : memref<32x1xf32, #tpu.memory_space<vmem>>, vector<32x1xf32>
    tpu.vector_store %arg9[%c0_41, %c0_42], %88 {strides = array<i32>} : memref<32x1xf32, #tpu.memory_space<vmem>>, vector<32x1xf32>,
    %c0_43 = arith.constant 0 : index
    %c0_44 = arith.constant 0 : index
    %90 = vector.load %arg10[%c0_43, %c0_44] : memref<32x1xf32, #tpu.memory_space<vmem>>, vector<32x1xf32>
    %91 = arith.mulf %81, %81 : vector<32x128xf32>
    %cst_45 = arith.constant dense<0.000000e+00> : vector<32x1xf32>
    %92 = tpu.matmul %91, %36, %cst_45 {dimension_numbers = #tpu.dot_dimension_numbers<[1], [0], [0], [1], [0, 0, 1, 1], [], []>} : vector<32x128xf32>, vector<128x1xf32>, vector<32x1xf32> -> vector<32x1xf32>
    %93 = arith.addf %90, %92 : vector<32x1xf32>
    %c0_46 = arith.constant 0 : index
    %c0_47 = arith.constant 0 : index
    %94 = vector.load %arg10[%c0_46, %c0_47] : memref<32x1xf32, #tpu.memory_space<vmem>>, vector<32x1xf32>
    tpu.vector_store %arg10[%c0_46, %c0_47], %93 {strides = array<i32>} : memref<32x1xf32, #tpu.memory_space<vmem>>, vector<32x1xf32>,
    %c0_i32_48 = arith.constant 0 : i32
    %95 = arith.cmpi eq, %arg0, %c0_i32_48 : i32
    %96 = arith.extui %95 : i1 to i32
    %c0_i32_49 = arith.constant 0 : i32
    %97 = arith.cmpi ne, %96, %c0_i32_49 : i32
    scf.if %97 {
      %98 = arith.sitofp %0 : i32 to f32
      %c0_50 = arith.constant 0 : index
      %c0_51 = arith.constant 0 : index
      %99 = vector.load %arg9[%c0_50, %c0_51] : memref<32x1xf32, #tpu.memory_space<vmem>>, vector<32x1xf32>
      %100 = vector.broadcast %98 : f32 to vector<32x1xf32>
      %101 = arith.divf %99, %100 : vector<32x1xf32>
      %c0_52 = arith.constant 0 : index
      %c0_53 = arith.constant 0 : index
      %102 = vector.load %arg10[%c0_52, %c0_53] : memref<32x1xf32, #tpu.memory_space<vmem>>, vector<32x1xf32>
      %103 = vector.broadcast %98 : f32 to vector<32x1xf32>
      %104 = arith.divf %102, %103 : vector<32x1xf32>
      %105 = arith.mulf %101, %101 : vector<32x1xf32>
      %106 = arith.subf %104, %105 : vector<32x1xf32>
      %cst_54 = arith.constant 0.000000e+00 : f32
      %107 = vector.broadcast %cst_54 : f32 to vector<32x1xf32>
      %108 = arith.maximumf %106, %107 : vector<32x1xf32>
      %cst_55 = arith.constant 9.99999974E-6 : f32
      %109 = vector.broadcast %cst_55 : f32 to vector<32x1xf32>
      %110 = arith.addf %108, %109 : vector<32x1xf32>
      %111 = math.rsqrt %110 : vector<32x1xf32>
      %c104 = arith.constant 104 : index
      %c0_56 = arith.constant 0 : index
      %112 = vector.load %arg4[%c104, %c0_56] : memref<108x48xf32, #tpu.memory_space<vmem>>, vector<4x32xf32>
      %c104_57 = arith.constant 104 : index
      %c0_58 = arith.constant 0 : index
      %113 = vector.load %arg5[%c104_57, %c0_58] : memref<108x1xf32, #tpu.memory_space<vmem>>, vector<4x1xf32>
      %c0_59 = arith.constant 0 : index
      %c0_60 = arith.constant 0 : index
      %c0_61 = arith.constant 0 : index
      %114 = vector.load %arg8[%c0_59, %c0_60, %c0_61] : memref<1x32x128xf32, #tpu.memory_space<vmem>>, vector<1x32x128xf32>
      %115 = vector.shape_cast %114 : vector<1x32x128xf32> to vector<32x128xf32>
      %116 = vector.broadcast %101 : vector<32x1xf32> to vector<32x128xf32>
      %117 = arith.subf %115, %116 : vector<32x128xf32>
      %118 = vector.broadcast %111 : vector<32x1xf32> to vector<32x128xf32>
      %119 = arith.mulf %117, %118 : vector<32x128xf32>
      %cst_62 = arith.constant dense<0.000000e+00> : vector<4x128xf32>
      %120 = tpu.matmul %112, %119, %cst_62 {dimension_numbers = #tpu.dot_dimension_numbers<[1], [0], [0], [1], [0, 0, 1, 1], [], []>} : vector<4x32xf32>, vector<32x128xf32>, vector<4x128xf32> -> vector<4x128xf32>
      %121 = vector.broadcast %113 : vector<4x1xf32> to vector<4x128xf32>
      %122 = arith.addf %120, %121 : vector<4x128xf32>
      %c0_63 = arith.constant 0 : index
      %c0_64 = arith.constant 0 : index
      %123 = vector.load %arg6[%c0_63, %c0_64] : memref<4x128xf32, #tpu.memory_space<vmem>>, vector<4x128xf32>
      tpu.vector_store %arg6[%c0_63, %c0_64], %122 {strides = array<i32>} : memref<4x128xf32, #tpu.memory_space<vmem>>, vector<4x128xf32>,
      %c0_65 = arith.constant 0 : index
      %c0_66 = arith.constant 0 : index
      %124 = vector.load %arg7[%c0_65, %c0_66] : memref<1x1xf32, #tpu.memory_space<vmem>>, vector<1x1xf32>
      %cst_67 = arith.constant 2.400000e+01 : f32
      %125 = arith.mulf %98, %cst_67 : f32
      %126 = vector.broadcast %125 : f32 to vector<1x1xf32>
      %127 = arith.divf %124, %126 : vector<1x1xf32>
      %c0_68 = arith.constant 0 : index
      %c0_69 = arith.constant 0 : index
      %128 = vector.load %arg7[%c0_68, %c0_69] : memref<1x1xf32, #tpu.memory_space<vmem>>, vector<1x1xf32>
      tpu.vector_store %arg7[%c0_68, %c0_69], %127 {strides = array<i32>} : memref<1x1xf32, #tpu.memory_space<vmem>>, vector<1x1xf32>,
    } else {
    }
    return
  }
  func.func @transform_0(%arg0: i32, %arg1: memref<1xi32, #tpu.memory_space<smem>>) -> (i32, i32) {
    %c0_i32 = arith.constant 0 : i32
    %c0_i32_0 = arith.constant 0 : i32
    return %c0_i32, %arg0 : i32, i32
  }
  func.func @transform_1(%arg0: i32, %arg1: memref<1xi32, #tpu.memory_space<smem>>) -> (i32, i32) {
    %c0_i32 = arith.constant 0 : i32
    %c0_i32_0 = arith.constant 0 : i32
    return %c0_i32, %arg0 : i32, i32
  }
  func.func @transform_2(%arg0: i32, %arg1: memref<1xi32, #tpu.memory_space<smem>>) -> (i32, i32) {
    %c0_i32 = arith.constant 0 : i32
    %c0_i32_0 = arith.constant 0 : i32
    %c0_i32_1 = arith.constant 0 : i32
    return %c0_i32, %c0_i32_0 : i32, i32
  }
  func.func @transform_3(%arg0: i32, %arg1: memref<1xi32, #tpu.memory_space<smem>>) -> (i32, i32) {
    %c0_i32 = arith.constant 0 : i32
    %c0_i32_0 = arith.constant 0 : i32
    %c0_i32_1 = arith.constant 0 : i32
    return %c0_i32, %c0_i32_0 : i32, i32
  }
  func.func @transform_4(%arg0: i32, %arg1: memref<1xi32, #tpu.memory_space<smem>>) -> (i32, i32) {
    %c0_i32 = arith.constant 0 : i32
    %c0_i32_0 = arith.constant 0 : i32
    %c0_i32_1 = arith.constant 0 : i32
    return %c0_i32, %c0_i32_0 : i32, i32
  }
  func.func @transform_5(%arg0: i32, %arg1: memref<1xi32, #tpu.memory_space<smem>>) -> (i32, i32) {
    %c0_i32 = arith.constant 0 : i32
    %c0_i32_0 = arith.constant 0 : i32
    %c0_i32_1 = arith.constant 0 : i32
    return %c0_i32, %c0_i32_0 : i32, i32
  }
}

</mosaic_0001>

<bundles_post_ra>
// kernel: tpu_custom_call.1
= control target key start
LH: loop header
LB: loop body
LE: loop exit
PB: predicated region body
PF: predicated region fallthrough
CT: control target
= control target key end

     0   :  { %13 = vsyncpa [#allocation8], 0  ;;  %v43_v0 = vlaneseq  ;;  %vm119_vm0 = vcmask 195584   ;;  %v1996_v3 = vmov 0   ;;  %s2528_s0 = inlined_call_operand.<no memory space> [shape: s32[1], index: 0, kind: input, shape index: {}]   ;;  %s2529_s1 = inlined_call_operand.vmem [shape: f32[24,128], index: 1, kind: input, shape index: {}]   ;;  %s2530_s2 = inlined_call_operand.vmem [shape: s32[1,128], index: 2, kind: input, shape index: {}]   ;;  %s2531_s3 = inlined_call_operand.vmem [shape: f32[108,48], index: 3, kind: input, shape index: {}]   ;;  %s2532_s4 = inlined_call_operand.vmem [shape: f32[108,1], index: 4, kind: input, shape index: {}]   ;;  %s2533_s5 = inlined_call_operand.hbm [shape: f32[4,128], index: 5, kind: output, shape index: {0}]   ;;  %s2534_s6 = inlined_call_operand.hbm [shape: f32[1,1], index: 6, kind: output, shape index: {1}]  }
   0x1   :  { %v1392_v1 = vld [vmem:[%s2530_s2] ss:$0 sm:$0xff]  ;;  %1930 = vset.pattern.permute.xlu0 %v1996_v3  ;;  %1931 = vset.pattern.permute.xlu1 %v1996_v3  ;;  %v71_v9 = vld [vmem:[%s2532_s4 + $0x10] sm:$0xff]  ;;  %v2069_v11 = vld [vmem:[%s2529_s1 + $0x8] sm:$0xff] }
   0x2   :  { %v63_v2 = vld [vmem:[%s2531_s3] sm:$0xff]  ;;  %v2045_v4 = vshrl.u32 %v43_v0, 7  ;;  %v70_v12 = vld [vmem:[%s2532_s4 + $0x8] sm:$0xff]  ;;  %101 = vperm.xlu1 %1931, %v71_v9   ;;  %v72_v16 = vld [vmem:[%s2532_s4 + $0x18] sm:$0xff] }
   0x3   :  { %1589 = vmatprep.mubr.msk.f32.mxu0 %vm119_vm0, %v63_v2  ;;  %v69_v5 = vld [vmem:[%s2532_s4] sm:$0xff] }
   0x4   :  { %v2052_v6 = vadd.s32 8, %v2045_v4  ;;  %v51_v7 = vshra.s32 %v1392_v1, %v2045_v4  ;;  %v2056_v8 = vadd.s32 16, %v2045_v4  ;;  %91 = vperm.xlu0 %1930, %v69_v5   ;;  %v2064_v10 = vld [vmem:[%s2529_s1] sm:$0xff] }
   0x6   :  { %v52_v13 = vshra.s32 %v1392_v1, %v2052_v6  ;;  %v54_v14 = vand.u32 1, %v51_v7  ;;  %v53_v15 = vshra.s32 %v1392_v1, %v2056_v8 }
   0x7   :  { %14 = vsyncpa [#allocation10], 0  ;;  %v2081_v18 = vpack.c.bf16 %v2069_v11, %v2064_v10  ;;  %v73_v20 = vld [vmem:[%s2532_s4 + $0x20] sm:$0xff]  ;;  %106 = vperm.xlu1 %1931, %v72_v16   ;;  %v74_v21 = vld [vmem:[%s2532_s4 + $0x28] sm:$0xff]  ;;  %v1997_v35 = vmov 0.0|0.0   ;;  %vm1998_vm5 = vmmov 0   ;;  %v2166_v3 = vstv %s2528_s0  ;;  %s1185_s8 = scvt.s32.f32 %s2528_s0 }
   0x8   :  { %v55_v17 = vand.u32 1, %v52_v13  ;;  %vm57_vm1 = vcmp.eq.s32.totalorder %v54_v14, 0  ;;  %v56_v19 = vand.u32 1, %v53_v15  ;;  %96 = vperm.xlu0 %1930, %v70_v12   ;;  %v2092_v22 = vld [vmem:[%s2529_s1 + $0x10] sm:$0xff]  ;;  %v79_v24 = vld [vmem:[%s2532_s4 + $0x38] sm:$0xff]  ;;  %v64_v25 = vld [vmem:[%s2531_s3 + $0x8] sm:$0xff]  ;;  %1801 = vmatprep.subr.bf16.mxu1 %v1997_v35  ;;  %vm377_vm7 = vcmp.lt.s32.totalorder %v2052_v6, %v2166_v3 }
   0x9   :  { %v78_v23 = vld [vmem:[%s2532_s4 + $0x30] sm:$0xff]  ;;  %v80_v27 = vld [vmem:[%s2532_s4 + $0x40] sm:$0xff]  ;;  %v85_v28 = vld [vmem:[%s2532_s4 + $0x48] sm:$0xff]  ;;  %v1999_v36 = vmov 0.0   ;;  %vm254_vm6 = vcmask 392192   ;;  %vm376_vm8 = vcmp.lt.s32.totalorder %v2045_v4, %v2166_v3  ;;  %vm378_vm10 = vcmp.lt.s32.totalorder %v2056_v8, %v2166_v3  ;;  %s1359_s16 = smul.f32 24.0, %s1185_s8 }
   0xa   :  { %vm58_vm2 = vcmp.eq.s32.totalorder %v55_v17, 0  ;;  %vm59_vm4 = vcmp.eq.s32.totalorder %v56_v19, 0  ;;  %v65_v26 = vld [vmem:[%s2531_s3 + $0x10] sm:$0xff]  ;;  %v66_v29 = vld [vmem:[%s2531_s3 + $0x18] sm:$0xff]  ;;  %v67_v30 = vld [vmem:[%s2531_s3 + $0x20] sm:$0xff]  ;;  %1610 = vmatprep.mubr.msk.f32.mxu1 %vm1998_vm5, %v1999_v36 }
   0xb   :  { %vm1796_vm3 = vmpackc.low %vm58_vm2, %vm57_vm1  ;;  %116 = vperm.xlu1 %1931, %v74_v21   ;;  %v86_v31 = vld [vmem:[%s2532_s4 + $0x50] sm:$0xff]  ;;  %v87_v32 = vld [vmem:[%s2532_s4 + $0x58] sm:$0xff]  ;;  %v2000_v7 = vmov 1.0|1.0  }
   0xc   :  { %1797 = vmatprep.subr.msk.bf16.mxu0 %vm1796_vm3, %v2081_v18  ;;  %111 = vperm.xlu0 %1930, %v73_v20   ;;  %v68_v33 = vld [vmem:[%s2531_s3 + $0x28] sm:$0xff]  ;;  %v88_v34 = vld [vmem:[%s2532_s4 + $0x60] sm:$0xff]  ;;  %v75_v0 = vld [vmem:[%s2531_s3 + $0x30] sm:$0xff] }
   0xd   :  { %1800 = vmatpush3.bf16.msk.msra.mxu0 %vm1796_vm3, %v2081_v18  ;;  %v76_v1 = vld [vmem:[%s2531_s3 + $0x38] sm:$0xff]  ;;  %v77_v2 = vld [vmem:[%s2531_s3 + $0x40] sm:$0xff]  ;;  %vm2172_vm9 = vmpackc.low %vm377_vm7, %vm376_vm8 }
   0xe   :  { %1587 = vmatprep.subr.msk.mxu0 %vm59_vm4, %v2092_v22 }
   0xf   :  { %246 = vperm.xlu1 %1931, %v79_v24  }
  0x10   :  { %241 = vperm.xlu0 %1930, %v78_v23  }
  0x11   :  { %1588 = vmatpush3.msk.msra.mxu0 %vm59_vm4, %v2092_v22 }
  0x12   :  { %1590 = vmatmul.mubr.msk.f32.vlgmr.msra.gmra.mrb[0].mxu0 %vm119_vm0, %v64_v25  ;;  %1810 = vmatprep.subr.bf16.mxu0 %v1997_v35 }
  0x13   :  { %1592 = vmatprep.mubr.msk.f32.mxu0 %vm119_vm0, %v65_v26  ;;  %859 = vperm.xlu1 %1931, %v85_v28   ;;  %v2001_v28 = vmov 0.041666668  }
  0x14   :  { %251 = vperm.xlu0 %1930, %v80_v27  }
  0x16   :  { %1593 = vmatmul.mubr.msk.f32.gmra.mrb[2].mxu0 %vm119_vm0, %v66_v29 }
  0x17   :  { %1595 = vmatprep.mubr.msk.f32.mxu0 %vm119_vm0, %v67_v30  ;;  %869 = vperm.xlu1 %1931, %v87_v32   ;;  %v659_v30 = vmul.f32 %v2064_v10, %v2064_v10 }
  0x18   :  { %864 = vperm.xlu0 %1930, %v86_v31   ;;  %v660_v31 = vmul.f32 %v2069_v11, %v2069_v11 }
  0x1a   :  { %1596 = vmatmul.mubr.msk.f32.gmra.mrb[4].mxu0 %vm119_vm0, %v68_v33  ;;  %v1820_v32 = vpack.c.bf16 %v660_v31, %v659_v30  ;;  %v661_v33 = vmul.f32 %v2092_v22, %v2092_v22 }
  0x1b   :  { %1625 = vmatprep.mubr.msk.f32.mxu0 %vm1998_vm5, %v1999_v36 }
  0x1c   :  { %874 = vperm.xlu0 %1930, %v88_v34   ;;  %v82_v34 = vld [vmem:[%s2531_s3 + $0x50] sm:$0xff] }
  0x81   :  { %v102_v38 = vpop.permute.xlu1 %101 }
  0x83   :  { %v92_v37 = vpop.permute.xlu0 %91 }
  0x86   :  { %v107_v43 = vpop.permute.xlu1 %106 }
  0x87   :  { %v97_v39 = vpop.permute.xlu0 %96 }
  0x8a   :  { %v117_v53 = vpop.permute.xlu1 %116 }
  0x8b   :  { %v112_v56 = vpop.permute.xlu0 %111 }
  0x8e   :  { %v247_v14 = vpop.permute.xlu1 %246 }
  0x8f   :  { %v242_v13 = vpop.permute.xlu0 %241 }
  0x93   :  { %v252_v24 = vpop.permute.xlu0 %251 }
  0xe5   :  { %v1591_v40 = vpop.f32.mrb[0].mxu0 }
  0xe6   :  { %v210_v41 = vadd.f32 %v1591_v40, %v97_v39  ;;  %v204_v42 = vpop.f32.mrb[1].mxu0  ;;  %v344_v39 = vadd.s32 24, %v2045_v4 }
  0xe7   :  { %v205_v44 = vadd.f32 %v204_v42, %v92_v37  ;;  %v83_v37 = vld [vmem:[%s2531_s3 + $0x58] sm:$0xff]  ;;  %v346_v42 = vadd.s32 40, %v2045_v4 }
  0xe8   :  { %v234_v45 = vmax.f32 %v210_v41, 0.0  ;;  %vm379_vm11 = vcmp.lt.s32.totalorder %v344_v39, %v2166_v3  ;;  %v345_v41 = vadd.s32 32, %v2045_v4 }
  0xe9   :  { %v233_v46 = vmax.f32 %v205_v44, 0.0  ;;  %v1594_v47 = vpop.f32.mrb[2].mxu0  ;;  %vm2248_vm12 = vmpackc.low %vm379_vm11, %vm378_vm10  ;;  %vm381_vm14 = vcmp.lt.s32.totalorder %v346_v42, %v2166_v3  ;;  %v348_v44 = vadd.s32 56, %v2045_v4 }
  0xea   :  { %v220_v48 = vadd.f32 %v1594_v47, %v107_v43  ;;  %v214_v49 = vpop.f32.mrb[3].mxu0  ;;  %vm380_vm13 = vcmp.lt.s32.totalorder %v345_v41, %v2166_v3  ;;  %v347_v43 = vadd.s32 48, %v2045_v4  ;;  %v350_v47 = vadd.s32 72, %v2045_v4 }
  0xeb   :  { %v215_v50 = vadd.f32 %v214_v49, %v102_v38  ;;  %v1802_v51 = vpack.c.bf16 %v234_v45, %v233_v46  ;;  %v84_v38 = vld [vmem:[%s2531_s3 + $0x60] sm:$0xff]  ;;  %vm2266_vm15 = vmpackc.low %vm381_vm14, %vm380_vm13  ;;  %vm383_vm1 = vcmp.lt.s32.totalorder %v348_v44, %v2166_v3  ;;  %v349_v46 = vadd.s32 64, %v2045_v4 }
  0xec   :  { %v236_v52 = vmax.f32 %v220_v48, 0.0  ;;  %vm385_vm4 = vcmp.lt.s32.totalorder %v350_v47, %v2166_v3  ;;  %v351_v49 = vadd.s32 80, %v2045_v4 }
  0xed   :  { %v235_v54 = vmax.f32 %v215_v50, 0.0  ;;  %v1597_v55 = vpop.f32.mrb[4].mxu0  ;;  %1803 = vmatpush3.bf16.msra.mxu1 %v1802_v51  ;;  %vm384_vm3 = vcmp.lt.s32.totalorder %v349_v46, %v2166_v3  ;;  %v352_v50 = vadd.s32 88, %v2045_v4 }
  0xee   :  { %v230_v57 = vadd.f32 %v1597_v55, %v117_v53  ;;  %v224_v58 = vpop.f32.mrb[5].mxu0  ;;  %1804 = vmatprep.subr.bf16.mxu1 %v1997_v35  ;;  %vm386_vm7 = vcmp.lt.s32.totalorder %v351_v49, %v2166_v3  ;;  %v354_v53 = vadd.s32 104, %v2045_v4  ;;  %v355_v55 = vadd.s32 112, %v2045_v4 }
  0xef   :  { %v1805_v59 = vpack.c.bf16 %v236_v52, %v235_v54  ;;  %v225_v60 = vadd.f32 %v224_v58, %v112_v56  ;;  %vm387_vm8 = vcmp.lt.s32.totalorder %v352_v50, %v2166_v3  ;;  %v353_v52 = vadd.s32 96, %v2045_v4 }
  0xf0   :  { %v238_v61 = vmax.f32 %v230_v57, 0.0  ;;  %vm2320_vm10 = vmpackc.low %vm387_vm8, %vm386_vm7  ;;  %vm389_vm13 = vcmp.lt.s32.totalorder %v354_v53, %v2166_v3  ;;  %v356_v56 = vadd.s32 120, %v2045_v4 }
  0xf1   :  { %v237_v62 = vmax.f32 %v225_v60, 0.0  ;;  %1806 = vmatpush3.bf16.msra.mxu1 %v1805_v59  ;;  %vm388_vm11 = vcmp.lt.s32.totalorder %v353_v52, %v2166_v3 }
  0xf2   :  { %1807 = vmatprep.subr.bf16.mxu1 %v1997_v35  ;;  %vm2338_vm14 = vmpackc.low %vm389_vm13, %vm388_vm11 }
  0xf3   :  { %v1808_v63 = vpack.c.bf16 %v238_v61, %v237_v62 }
  0xf5   :  { %1809 = vmatpush3.bf16.msra.mxu1 %v1808_v63 }
  0xf6   :  { %1822 = vmatprep.subr.bf16.mxu1 %v1997_v35 }
  0xf8   :  { %1611 = vmatmul.mubr.msk.f32.vlgmr.msra.gmra.mrb[0].mxu1 %vm254_vm6, %v75_v0 }
  0xf9   :  { %1613 = vmatprep.mubr.msk.f32.mxu1 %vm1998_vm5, %v1999_v36  ;;  %1824 = vmatpush3.bf16.msk.msra.mxu1 %vm2172_vm9, %v2000_v7 }
  0xfa   :  { %1825 = vmatprep.subr.bf16.mxu1 %v1997_v35 }
  0xfc   :  { %1614 = vmatmul.mubr.msk.f32.gmra.mrb[2].mxu1 %vm254_vm6, %v76_v1 }
  0xfd   :  { %1616 = vmatprep.mubr.msk.f32.mxu1 %vm1998_vm5, %v1999_v36  ;;  %1827 = vmatpush3.bf16.msk.msra.mxu1 %vm2248_vm12, %v2000_v7 }
  0xfe   :  { %1828 = vmatprep.subr.bf16.mxu1 %v1997_v35 }
 0x100   :  { %1617 = vmatmul.mubr.msk.f32.gmra.mrb[4].mxu1 %vm254_vm6, %v77_v2  ;;  %vm2302_vm6 = vmpackc.low %vm385_vm4, %vm384_vm3  ;;  %vm28_vm4 = vcmask 7168  }
 0x101   :  { %1687 = vmatprep.mubr.msk.f32.mxu1 %vm1998_vm5, %v1999_v36  ;;  %1830 = vmatpush3.bf16.msk.msra.mxu1 %vm2266_vm15, %v2000_v7  ;;  %30 = vst.msk [vmem:[#allocation3 + $0x8] sm:$0xff] %vm28_vm4, %v1999_v36  ;;  %29 = vst.msk [vmem:[#allocation3] sm:$0xff] %vm28_vm4, %v1999_v36 }
 0x102   :  { %1831 = vmatprep.subr.bf16.mxu1 %v1997_v35  ;;  %31 = vst.msk [vmem:[#allocation3 + $0x10] sm:$0xff] %vm28_vm4, %v1999_v36  ;;  %32 = vst.msk [vmem:[#allocation3 + $0x18] sm:$0xff] %vm28_vm4, %v1999_v36 }
 0x103   :  { %33 = vst.msk [vmem:[#allocation4] sm:$0xff] %vm28_vm4, %v1999_v36  ;;  %34 = vst.msk [vmem:[#allocation4 + $0x8] sm:$0xff] %vm28_vm4, %v1999_v36 }
 0x104   :  { %35 = vst.msk [vmem:[#allocation4 + $0x10] sm:$0xff] %vm28_vm4, %v1999_v36  ;;  %36 = vst.msk [vmem:[#allocation4 + $0x18] sm:$0xff] %vm28_vm4, %v1999_v36 }
 0x108   :  { %v985_v45 = vld [vmem:[#allocation3 + $0x8] sm:$0xff]  ;;  %v984_v48 = vld [vmem:[#allocation3] sm:$0xff] }
 0x1cb   :  { %v330_v9 = vpop.f32.mrb[0].mxu1 }
 0x1cc   :  { %v1612_v12 = vpop.f32.mrb[1].mxu1  ;;  %v2180_v6 = vadd.f32 %v330_v9, %v242_v13  ;;  %v575_v9 = vsub.s32 0, %v2045_v4 }
 0x1ce   :  { %v497_v25 = vmul.f32 %v2180_v6, %v2180_v6 }
 0x1cf   :  { %v335_v15 = vpop.f32.mrb[2].mxu1 }
 0x1d0   :  { %v2182_v16 = vadd.f32 %v335_v15, %v247_v14  ;;  %v1615_v17 = vpop.f32.mrb[3].mxu1 }
 0x1d2   :  { %v1811_v19 = vpack.c.bf16 %v2182_v16, %v2180_v6  ;;  %v498_v21 = vmul.f32 %v2182_v16, %v2182_v16 }
 0x1d3   :  { %v340_v20 = vpop.f32.mrb[4].mxu1 }
 0x1d4   :  { %1812 = vmatpush3.bf16.msra.mxu0 %v1811_v19  ;;  %v1618_v23 = vpop.f32.mrb[5].mxu1  ;;  %v2191_v26 = vadd.f32 %v340_v20, %v252_v24  ;;  %v1814_v27 = vpack.c.bf16 %v498_v21, %v497_v25  ;;  %v865_v20 = vpop.permute.xlu0 %864 }
 0x1d5   :  { %1623 = vmatprep.subr.mxu0 %v1999_v36  ;;  %v860_v23 = vpop.permute.xlu1 %859 }
 0x1d6   :  { %v499_v29 = vmul.f32 %v2191_v26, %v2191_v26 }
 0x1d8   :  { %1624 = vmatpush3.msra.mxu0 %v2191_v26 }
 0x1d9   :  { %1626 = vmatmul.mubr.msk.f32.vlgmr.msra.gmra.mrb[6].mxu0 %vm119_vm0, %v2001_v28  ;;  %1813 = vmatprep.subr.bf16.mxu0 %v1997_v35  ;;  %v870_v41 = vpop.permute.xlu1 %869 }
 0x1da   :  { %1815 = vmatpush3.bf16.msra.mxu0 %v1814_v27  ;;  %1634 = vmatprep.mubr.msk.f32.mxu0 %vm1998_vm5, %v1999_v36 }
 0x1db   :  { %1632 = vmatprep.subr.mxu0 %v1999_v36 }
 0x1de   :  { %1633 = vmatpush3.msra.mxu0 %v499_v29 }
 0x1df   :  { %1635 = vmatmul.mubr.msk.f32.vlgmr.msra.gmra.mrb[8].mxu0 %vm119_vm0, %v2001_v28  ;;  %1816 = vmatprep.subr.bf16.mxu0 %v1997_v35 }
 0x1e0   :  { %1818 = vmatpush3.bf16.msra.mxu0 %v2081_v18  ;;  %1643 = vmatprep.mubr.msk.f32.mxu0 %vm1998_vm5, %v1999_v36  ;;  %v81_v18 = vld [vmem:[%s2531_s3 + $0x48] sm:$0xff] }
 0x1e1   :  { %1641 = vmatprep.subr.mxu0 %v1999_v36 }
 0x1e4   :  { %1642 = vmatpush3.msra.mxu0 %v2092_v22 }
 0x1e5   :  { %1819 = vmatprep.subr.bf16.mxu0 %v1997_v35  ;;  %1644 = vmatmul.mubr.msk.f32.vlgmr.msra.gmra.mrb[10].mxu0 %vm119_vm0, %v2001_v28 }
 0x1e6   :  { %1821 = vmatpush3.bf16.msra.mxu0 %v1820_v32  ;;  %1652 = vmatprep.mubr.msk.f32.mxu0 %vm1998_vm5, %v1999_v36 }
 0x1e7   :  { %1650 = vmatprep.subr.mxu0 %v1999_v36 }
 0x1ea   :  { %1651 = vmatpush3.msra.mxu0 %v661_v33 }
 0x1eb   :  { %1653 = vmatmul.mubr.msk.f32.vlgmr.msra.gmra.mrb[12].mxu0 %vm119_vm0, %v2001_v28  ;;  %1847 = vmatprep.subr.bf16.mxu0 %v1811_v19 }
 0x1ec   :  { %1849 = vmatpush3.bf16.msra.mxu0 %v1811_v19  ;;  %1702 = vmatprep.mubr.msk.f32.mxu0 %vm119_vm0, %v81_v18 }
 0x1ed   :  { %1700 = vmatprep.subr.mxu0 %v2191_v26 }
 0x1f0   :  { %1701 = vmatpush3.msra.mxu0 %v2191_v26 }
 0x1f1   :  { %1703 = vmatmul.mubr.msk.f32.vlgmr.msra.gmra.mrb[14].mxu0 %vm119_vm0, %v82_v34  ;;  %1851 = vmatprep.subr.msk.bf16.mxu0 %vm2172_vm9, %v2000_v7 }
 0x1f2   :  { %1705 = vmatprep.mubr.msk.f32.mxu0 %vm119_vm0, %v83_v37  ;;  %1853 = vmatpush3.bf16.msk.msra.mxu0 %vm2172_vm9, %v2000_v7  ;;  %v875_v37 = vpop.permute.xlu0 %874 }
 0x1f3   :  { %1855 = vmatprep.subr.msk.bf16.mxu0 %vm2248_vm12, %v2000_v7 }
 0x1f5   :  { %1706 = vmatmul.mubr.msk.f32.gmra.mrb[16].mxu0 %vm119_vm0, %v84_v38  ;;  %vm382_vm0 = vcmp.lt.s32.totalorder %v347_v43, %v2166_v3 }
 0x1f6   :  { %1857 = vmatpush3.bf16.msk.msra.mxu0 %vm2248_vm12, %v2000_v7  ;;  %vm2284_vm2 = vmpackc.low %vm383_vm1, %vm382_vm0  ;;  %vm390_vm0 = vcmp.lt.s32.totalorder %v355_v55, %v2166_v3  ;;  %vm391_vm1 = vcmp.lt.s32.totalorder %v356_v56, %v2166_v3 }
 0x1f7   :  { %1859 = vmatprep.subr.msk.bf16.mxu0 %vm2266_vm15, %v2000_v7  ;;  %1833 = vmatpush3.bf16.msk.msra.mxu1 %vm2284_vm2, %v2000_v7  ;;  %vm2356_vm3 = vmpackc.low %vm391_vm1, %vm390_vm0 }
 0x1f8   :  { %1834 = vmatprep.subr.bf16.mxu1 %v1997_v35 }
 0x1fa   :  { %1861 = vmatpush3.bf16.msk.msra.mxu0 %vm2266_vm15, %v2000_v7 }
 0x1fb   :  { %1863 = vmatprep.subr.msk.bf16.mxu0 %vm2284_vm2, %v2000_v7  ;;  %1836 = vmatpush3.bf16.msk.msra.mxu1 %vm2302_vm6, %v2000_v7 }
 0x1fc   :  { %1837 = vmatprep.subr.bf16.mxu1 %v1997_v35 }
 0x1fe   :  { %1865 = vmatpush3.bf16.msk.msra.mxu0 %vm2284_vm2, %v2000_v7 }
 0x1ff   :  { %1867 = vmatprep.subr.msk.bf16.mxu0 %vm2302_vm6, %v2000_v7  ;;  %1839 = vmatpush3.bf16.msk.msra.mxu1 %vm2320_vm10, %v2000_v7 }
 0x200   :  { %1840 = vmatprep.subr.bf16.mxu1 %v1997_v35 }
 0x202   :  { %1869 = vmatpush3.bf16.msk.msra.mxu0 %vm2302_vm6, %v2000_v7 }
 0x203   :  { %1871 = vmatprep.subr.msk.bf16.mxu0 %vm2320_vm10, %v2000_v7  ;;  %1842 = vmatpush3.bf16.msk.msra.mxu1 %vm2338_vm14, %v2000_v7 }
 0x204   :  { %1843 = vmatprep.subr.bf16.mxu1 %v1997_v35 }
 0x206   :  { %1873 = vmatpush3.bf16.msk.msra.mxu0 %vm2320_vm10, %v2000_v7 }
 0x207   :  { %1875 = vmatprep.subr.msk.bf16.mxu0 %vm2338_vm14, %v2000_v7  ;;  %1845 = vmatpush3.bf16.msk.msra.mxu1 %vm2356_vm3, %v2000_v7 }
 0x208   :  { %1883 = vmatprep.subr.msk.bf16.mxu1 %vm2172_vm9, %v2000_v7 }
 0x20a   :  { %1877 = vmatpush3.bf16.msk.msra.mxu0 %vm2338_vm14, %v2000_v7 }
 0x20b   :  { %1879 = vmatprep.subr.msk.bf16.mxu0 %vm2356_vm3, %v2000_v7 }
 0x20e   :  { %1881 = vmatpush3.bf16.msk.msra.mxu0 %vm2356_vm3, %v2000_v7 }
 0x20f   :  { %1914 = vmatprep.subr.bf16.mxu0 %v1997_v35 }
 0x2ac   :  { %v493_v58 = vpop.f32.mrb[6].mxu0 }
 0x2ad   :  { %v1627_v59 = vpop.f32.mrb[7].mxu0  ;;  %v570_v60 = vmul.f32 %v493_v58, %v493_v58  ;;  %v576_v17 = vrot.slane %v493_v58, %v575_v9 }
 0x2af   :  { %v577_v25 = vsub.f32 %v2180_v6, %v576_v17  ;;  %v578_v27 = vsub.f32 %v2182_v16, %v576_v17  ;;  %v579_v28 = vsub.f32 %v2191_v26, %v576_v17 }
 0x2b2   :  { %v566_v61 = vpop.f32.mrb[8].mxu0 }
 0x2b3   :  { %v571_v62 = vsub.f32 %v566_v61, %v570_v60  ;;  %v1636_v63 = vpop.f32.mrb[9].mxu0 }
 0x2b5   :  { %v572_v0 = vmax.f32 %v571_v62, 0.0 }
 0x2b7   :  { %v580_v1 = vadd.f32 1e-05, %v572_v0  ;;  %v987_v0 = vld [vmem:[#allocation3 + $0x18] sm:$0xff] }
 0x2b8   :  { %v655_v2 = vpop.f32.mrb[10].mxu0 }
 0x2b9   :  { %1932 = vrsqrt.f32 %v580_v1  ;;  %v1645_v3 = vpop.f32.mrb[11].mxu0  ;;  %v732_v12 = vmul.f32 %v655_v2, %v655_v2  ;;  %v738_v26 = vrot.slane %v655_v2, %v575_v9  ;;  %v986_v1 = vld [vmem:[#allocation3 + $0x10] sm:$0xff] }
 0x2bb   :  { %v739_v49 = vsub.f32 %v2064_v10, %v738_v26  ;;  %v740_v50 = vsub.f32 %v2069_v11, %v738_v26  ;;  %v741_v52 = vsub.f32 %v2092_v22, %v738_v26  ;;  %v1084_v26 = vld [vmem:[#allocation4 + $0x18] sm:$0xff] }
 0x2be   :  { %v728_v13 = vpop.f32.mrb[12].mxu0 }
 0x2bf   :  { %v733_v14 = vsub.f32 %v728_v13, %v732_v12  ;;  %v1654_v15 = vpop.f32.mrb[13].mxu0 }
 0x2c1   :  { %v734_v19 = vmax.f32 %v733_v14, 0.0 }
 0x2c3   :  { %v1933_v21 = vpop.eup %1932  ;;  %v742_v24 = vadd.f32 1e-05, %v734_v19 }
 0x2c4   :  { %v585_v29 = vrot.slane %v1933_v21, %v575_v9  ;;  %v1704_v30 = vpop.f32.mrb[14].mxu0 }
 0x2c5   :  { %1934 = vrsqrt.f32 %v742_v24  ;;  %v961_v4 = vadd.f32 %v1704_v30, %v865_v20  ;;  %v955_v31 = vpop.f32.mrb[15].mxu0 }
 0x2c6   :  { %v956_v32 = vadd.f32 %v955_v31, %v860_v23  ;;  %v586_v33 = vmul.f32 %v585_v29, %v577_v25  ;;  %v587_v18 = vmul.f32 %v585_v29, %v578_v27  ;;  %v588_v34 = vmul.f32 %v585_v29, %v579_v28 }
 0x2c7   :  { %v2395_v42 = vmax.f32 %v961_v4, 0.0 }
 0x2c8   :  { %v2393_v38 = vmax.f32 %v956_v32, 0.0  ;;  %v1707_v39 = vpop.f32.mrb[16].mxu0 }
 0x2c9   :  { %v971_v6 = vadd.f32 %v1707_v39, %v875_v37  ;;  %v965_v16 = vpop.f32.mrb[17].mxu0  ;;  %v1086_v5 = vmul.f32 %v2395_v42, %v2395_v42  ;;  %v1082_v37 = vld [vmem:[#allocation4 + $0x8] sm:$0xff]  ;;  %v1081_v39 = vld [vmem:[#allocation4] sm:$0xff] }
 0x2ca   :  { %v966_v43 = vadd.f32 %v965_v16, %v870_v41  ;;  %1740 = vmatprep.mubr.f32.mxu0 %v2393_v38  ;;  %v1085_v22 = vmul.f32 %v2393_v38, %v2393_v38 }
 0x2cb   :  { %1741 = vmatmul.mubr.f32.vlgmr.msra.gmra.mrb[18].mxu0 %v2395_v42  ;;  %v2401_v46 = vmax.f32 %v971_v6, 0.0 }
 0x2cc   :  { %v2399_v44 = vmax.f32 %v966_v43, 0.0 }
 0x2cd   :  { %v1088_v8 = vmul.f32 %v2401_v46, %v2401_v46 }
 0x2ce   :  { %1743 = vmatprep.mubr.f32.mxu0 %v2399_v44  ;;  %v1087_v40 = vmul.f32 %v2399_v44, %v2399_v44 }
 0x2cf   :  { %v1935_v47 = vpop.eup %1934  ;;  %1744 = vmatmul.mubr.f32.gmra.mrb[20].mxu0 %v2401_v46 }
 0x2d0   :  { %v747_v53 = vrot.slane %v1935_v47, %v575_v9  ;;  %1792 = vmatprep.mubr.msk.f32.mxu0 %vm1998_vm5, %v1999_v36  ;;  %v1083_v47 = vld [vmem:[#allocation4 + $0x10] sm:$0xff] }
 0x2d2   :  { %v748_v55 = vmul.f32 %v747_v53, %v739_v49  ;;  %v749_v56 = vmul.f32 %v747_v53, %v740_v50  ;;  %v750_v58 = vmul.f32 %v747_v53, %v741_v52 }
 0x2d4   :  { %v751_v59 = vsub.f32 %v586_v33, %v748_v55  ;;  %v752_v60 = vsub.f32 %v587_v18, %v749_v56  ;;  %v753_v61 = vsub.f32 %v588_v34, %v750_v58 }
 0x2d6   :  { %v754_v62 = vand.u32 2147483647, %v751_v59  ;;  %v755_v10 = vand.u32 2147483647, %v752_v60  ;;  %v756_v11 = vand.u32 2147483647, %v753_v61 }
 0x2d8   :  { %1688 = vmatmul.mubr.f32.vlgmr.msra.gmra.mrb[6].mxu1 %v754_v62 }
 0x2d9   :  { %1885 = vmatpush3.bf16.msk.msra.mxu1 %vm2172_vm9, %v2000_v7  ;;  %1690 = vmatprep.mubr.msk.f32.mxu1 %vm1998_vm5, %v1999_v36  ;;  %vm1283_vm9 = vcmask 261120  }
 0x2da   :  { %1887 = vmatprep.subr.msk.bf16.mxu1 %vm2248_vm12, %v2000_v7 }
 0x2dc   :  { %1691 = vmatmul.mubr.f32.gmra.mrb[8].mxu1 %v755_v10 }
 0x2dd   :  { %1889 = vmatpush3.bf16.msk.msra.mxu1 %vm2248_vm12, %v2000_v7  ;;  %1693 = vmatprep.mubr.msk.f32.mxu1 %vm1998_vm5, %v1999_v36  ;;  %vm37_vm5 = vcmask 0  }
 0x2de   :  { %1891 = vmatprep.subr.msk.bf16.mxu1 %vm2266_vm15, %v2000_v7  ;;  %38 = vst.msk [vmem:[#allocation9] sm:$0x1] %vm37_vm5, %v1999_v36 }
 0x2e0   :  { %1694 = vmatmul.mubr.f32.gmra.mrb[10].mxu1 %v756_v11 }
 0x2e1   :  { %1893 = vmatpush3.bf16.msk.msra.mxu1 %vm2266_vm15, %v2000_v7  ;;  %1778 = vmatprep.mubr.f32.mxu1 %v1085_v22 }
 0x2e2   :  { %1895 = vmatprep.subr.msk.bf16.mxu1 %vm2284_vm2, %v2000_v7 }
 0x2e5   :  { %1897 = vmatpush3.bf16.msk.msra.mxu1 %vm2284_vm2, %v2000_v7 }
 0x2e6   :  { %1899 = vmatprep.subr.msk.bf16.mxu1 %vm2302_vm6, %v2000_v7 }
 0x2e9   :  { %1901 = vmatpush3.bf16.msk.msra.mxu1 %vm2302_vm6, %v2000_v7 }
 0x2ea   :  { %1903 = vmatprep.subr.msk.bf16.mxu1 %vm2320_vm10, %v2000_v7 }
 0x2ed   :  { %1905 = vmatpush3.bf16.msk.msra.mxu1 %vm2320_vm10, %v2000_v7 }
 0x2ee   :  { %1907 = vmatprep.subr.msk.bf16.mxu1 %vm2338_vm14, %v2000_v7 }
 0x2f1   :  { %1909 = vmatpush3.bf16.msk.msra.mxu1 %vm2338_vm14, %v2000_v7 }
 0x2f2   :  { %1911 = vmatprep.subr.msk.bf16.mxu1 %vm2356_vm3, %v2000_v7 }
 0x2f5   :  { %1913 = vmatpush3.bf16.msk.msra.mxu1 %vm2356_vm3, %v2000_v7  ;;  %v1190_v7 = vstv %s1185_s8 }
 0x2f6   :  { %1936 = vrcp.f32 %v1190_v7 }
 0x2f8   :  { %1779 = vmatmul.mubr.f32.vlgmr.msra.gmra.mrb[12].mxu1 %v1086_v5 }
 0x2f9   :  { %1781 = vmatprep.mubr.f32.mxu1 %v1087_v40 }
 0x2fc   :  { %1782 = vmatmul.mubr.f32.gmra.mrb[14].mxu1 %v1088_v8 }
 0x300   :  { %v1937_v13 = vpop.eup %1936 }
 0x39e   :  { %v1742_v51 = vpop.f32.mrb[18].mxu0 }
 0x39f   :  { %v1074_v54 = vadd.f32 %v1742_v51, %v985_v45  ;;  %v1054_v57 = vpop.f32.mrb[19].mxu0 }
 0x3a0   :  { %v1073_v63 = vadd.f32 %v1054_v57, %v984_v48 }
 0x3a1   :  { %1078 = vst.msk [vmem:[#allocation3 + $0x8] sm:$0xff] %vm28_vm4, %v1074_v54 }
 0x3a2   :  { %1077 = vst.msk [vmem:[#allocation3] sm:$0xff] %vm28_vm4, %v1073_v63  ;;  %v1745_v2 = vpop.f32.mrb[20].mxu0 }
 0x3a3   :  { %v1076_v3 = vadd.f32 %v1745_v2, %v987_v0  ;;  %v1064_v9 = vpop.f32.mrb[21].mxu0 }
 0x3a4   :  { %v1075_v12 = vadd.f32 %v1064_v9, %v986_v1 }
 0x3a5   :  { %1080 = vst.msk [vmem:[#allocation3 + $0x18] sm:$0xff] %vm28_vm4, %v1076_v3 }
 0x3a6   :  { %1079 = vst.msk [vmem:[#allocation3 + $0x10] sm:$0xff] %vm28_vm4, %v1075_v12 }
 0x3a8   :  { %v1187_v14 = vld [vmem:[#allocation3 + $0x8] sm:$0xff] }
 0x3a9   :  { %v1193_v15 = vmul.f32 %v1937_v13, %v1187_v14  ;;  %v1186_v17 = vld [vmem:[#allocation3] sm:$0xff] }
 0x3aa   :  { %v1192_v19 = vmul.f32 %v1937_v13, %v1186_v17 }
 0x3ab   :  { %v824_v20 = vpop.f32.mrb[6].mxu1  ;;  %1237 = vperm.xlu0 %1930, %v1193_v15   ;;  %v1205_v56 = vmul.f32 %v1193_v15, %v1193_v15 }
 0x3ac   :  { %v1689_v21 = vpop.f32.mrb[7].mxu1  ;;  %1232 = vperm.xlu1 %1931, %v1192_v19   ;;  %v1189_v23 = vld [vmem:[#allocation3 + $0x18] sm:$0xff]  ;;  %v839_v29 = vsel %vm28_vm4, %v824_v20, 0.0  ;;  %v1204_v60 = vmul.f32 %v1192_v19, %v1192_v19 }
 0x3ad   :  { %v1195_v24 = vmul.f32 %v1937_v13, %v1189_v23  ;;  %v1188_v25 = vld [vmem:[#allocation3 + $0x10] sm:$0xff] }
 0x3ae   :  { %v1194_v27 = vmul.f32 %v1937_v13, %v1188_v25 }
 0x3af   :  { %v829_v28 = vpop.f32.mrb[8].mxu1  ;;  %1247 = vperm.xlu0 %1930, %v1195_v24   ;;  %v1207_v22 = vmul.f32 %v1195_v24, %v1195_v24 }
 0x3b0   :  { %v840_v30 = vsel %vm28_vm4, %v829_v28, 0.0  ;;  %v1692_v4 = vpop.f32.mrb[9].mxu1  ;;  %1242 = vperm.xlu1 %1931, %v1194_v27   ;;  %v1206_v7 = vmul.f32 %v1194_v27, %v1194_v27 }
 0x3b1   :  { %v841_v31 = vadd.f32 %v840_v30, %v839_v29 }
 0x3b3   :  { %v834_v32 = vpop.f32.mrb[10].mxu1 }
 0x3b4   :  { %v842_v33 = vsel %vm28_vm4, %v834_v32, 0.0  ;;  %v1695_v18 = vpop.f32.mrb[11].mxu1 }
 0x3b5   :  { %v843_v34 = vadd.f32 %v842_v33, %v841_v31 }
 0x3cb   :  { %v1780_v41 = vpop.f32.mrb[12].mxu1 }
 0x3cc   :  { %v1175_v6 = vadd.f32 %v1780_v41, %v1082_v37  ;;  %v1155_v16 = vpop.f32.mrb[13].mxu1 }
 0x3cd   :  { %v1174_v43 = vadd.f32 %v1155_v16, %v1081_v39  ;;  %v757_v16 = vld [vmem:[#allocation9] sm:$0x1] }
 0x3ce   :  { %1179 = vst.msk [vmem:[#allocation4 + $0x8] sm:$0xff] %vm28_vm4, %v1175_v6 }
 0x3cf   :  { %1178 = vst.msk [vmem:[#allocation4] sm:$0xff] %vm28_vm4, %v1174_v43  ;;  %v1783_v49 = vpop.f32.mrb[14].mxu1 }
 0x3d0   :  { %v1177_v50 = vadd.f32 %v1783_v49, %v1084_v26  ;;  %v1165_v52 = vpop.f32.mrb[15].mxu1 }
 0x3d1   :  { %v1176_v53 = vadd.f32 %v1165_v52, %v1083_v47 }
 0x3d2   :  { %1181 = vst.msk [vmem:[#allocation4 + $0x18] sm:$0xff] %vm28_vm4, %v1177_v50 }
 0x3d3   :  { %1180 = vst.msk [vmem:[#allocation4 + $0x10] sm:$0xff] %vm28_vm4, %v1176_v53 }
 0x3d5   :  { %v1197_v55 = vld [vmem:[#allocation4 + $0x8] sm:$0xff] }
 0x3d6   :  { %v1201_v58 = vmul.f32 %v1937_v13, %v1197_v55  ;;  %v1196_v59 = vld [vmem:[#allocation4] sm:$0xff] }
 0x3d7   :  { %v1200_v61 = vmul.f32 %v1937_v13, %v1196_v59 }
 0x3d8   :  { %v1209_v62 = vsub.f32 %v1201_v58, %v1205_v56 }
 0x3d9   :  { %v1208_v10 = vsub.f32 %v1200_v61, %v1204_v60  ;;  %v1199_v11 = vld [vmem:[#allocation4 + $0x18] sm:$0xff] }
 0x3da   :  { %v1213_v5 = vmax.f32 %v1209_v62, 0.0  ;;  %v1203_v40 = vmul.f32 %v1937_v13, %v1199_v11  ;;  %v1198_v8 = vld [vmem:[#allocation4 + $0x10] sm:$0xff] }
 0x3db   :  { %v1212_v45 = vmax.f32 %v1208_v10, 0.0  ;;  %v1202_v48 = vmul.f32 %v1937_v13, %v1198_v8  ;;  %v1225_v13 = vld [vmem:[%s2532_s4 + $0x68] sm:$0xf] }
 0x3dc   :  { %v1217_v51 = vadd.f32 1e-05, %v1213_v5  ;;  %v1211_v54 = vsub.f32 %v1203_v40, %v1207_v22 }
 0x3dd   :  { %v1216_v57 = vadd.f32 1e-05, %v1212_v45  ;;  %v1210_v63 = vsub.f32 %v1202_v48, %v1206_v7 }
 0x3de   :  { %1938 = vrsqrt.f32 %v1217_v51  ;;  %v1215_v0 = vmax.f32 %v1211_v54, 0.0 }
 0x3df   :  { %1940 = vrsqrt.f32 %v1216_v57  ;;  %v1214_v1 = vmax.f32 %v1210_v63, 0.0 }
 0x3e0   :  { %v1219_v2 = vadd.f32 1e-05, %v1215_v0 }
 0x3e1   :  { %v1218_v3 = vadd.f32 1e-05, %v1214_v1 }
 0x3e2   :  { %1942 = vrsqrt.f32 %v1219_v2 }
 0x3e3   :  { %1944 = vrsqrt.f32 %v1218_v3 }
 0x3e8   :  { %v1939_v9 = vpop.eup %1938 }
 0x3e9   :  { %v1941_v12 = vpop.eup %1940  ;;  %1261 = vperm.xlu0 %1930, %v1939_v9  }
 0x3ea   :  { %1256 = vperm.xlu1 %1931, %v1941_v12  }
 0x3ec   :  { %v1943_v14 = vpop.eup %1942 }
 0x3ed   :  { %v1945_v15 = vpop.eup %1944  ;;  %1271 = vperm.xlu0 %1930, %v1943_v14  }
 0x3ee   :  { %1266 = vperm.xlu1 %1931, %v1945_v15  }
 0x3f1   :  { %1280 = vperm.xlu0 %1930, %v1225_v13  }
 0x412   :  { %844 = vadd.xlane.f32.xlu1 %v843_v34 }
 0x42a   :  { %v1238_v17 = vpop.permute.xlu0 %1237 }
 0x42b   :  { %v1233_v19 = vpop.permute.xlu1 %1232  ;;  %v1251_v23 = vsub.f32 %v2395_v42, %v1238_v17 }
 0x42c   :  { %v1250_v24 = vsub.f32 %v2393_v38, %v1233_v19  ;;  %v1224_v38 = vld [vmem:[%s2531_s3 + $0x68] sm:$0xf]  ;;  %s2002_s3 = smov [#allocation9]  }
 0x42d   :  { %s1380_s18 = sshll.u32 %s2002_s3, 4  ;;  %s1381_s18 = int_to_ptr.vmem [resolvable:$true] %s1380_s18 }
 0x42e   :  { %v1248_v20 = vpop.permute.xlu0 %1247  ;;  %s1948_s19 = scalar_lea.vmem %s1381_s18, 16  ;;  %s1952_s0 = scalar_lea.vmem %s1381_s18, 32 }
 0x42f   :  { %v1243_v21 = vpop.permute.xlu1 %1242  ;;  %v1253_v30 = vsub.f32 %v2401_v46, %v1248_v20  ;;  %p1949_p0 = scmp.ne.s32.totalorder %s1381_s18, %s1948_s19  ;;  %p1953_p1 = scmp.lt.s32.totalorder %s1381_s18, %s1381_s18 }
 0x430   :  { %v1252_v4 = vsub.f32 %v2399_v44, %v1243_v21  ;;  %p1954_p2 = scmp.lt.s32.totalorder %s1952_s0, %s1948_s19 }
 0x432   :  { %p1955_p3 = por %p1954_p2, %p1953_p1 }
 0x434   :  { %p1956_p4 = pnand %p1955_p3, %p1949_p0 }
 0x468   :  { %v1262_v25 = vpop.permute.xlu0 %1261 }
 0x469   :  { %v1275_v27 = vmul.f32 %v1262_v25, %v1251_v23  ;;  %v1257_v28 = vpop.permute.xlu1 %1256 }
 0x46a   :  { %v1274_v29 = vmul.f32 %v1257_v28, %v1250_v24 }
 0x46c   :  { %v1915_v31 = vpack.c.bf16 %v1275_v27, %v1274_v29  ;;  %v1272_v32 = vpop.permute.xlu0 %1271 }
 0x46d   :  { %v1277_v33 = vmul.f32 %v1272_v32, %v1253_v30  ;;  %v1267_v36 = vpop.permute.xlu1 %1266 }
 0x46e   :  { %v1276_v18 = vmul.f32 %v1267_v36, %v1252_v4  ;;  %1916 = vmatpush3.bf16.msra.mxu0 %v1915_v31 }
 0x46f   :  { %1917 = vmatprep.subr.bf16.mxu0 %v1997_v35  ;;  %v1360_v35 = vstv %s1359_s16 }
 0x470   :  { %v1918_v34 = vpack.c.bf16 %v1277_v33, %v1276_v18  ;;  %1946 = vrcp.f32 %v1360_v35 }
 0x472   :  { %1919 = vmatpush3.bf16.msra.mxu0 %v1918_v34 }
 0x475   :  { %1793 = vmatmul.mubr.msk.f32.vlgmr.msra.gmra.mrb[22].mxu0 %vm1283_vm9, %v1224_v38 }
 0x47a   :  { %v1947_v47 = vpop.eup %1946 }
 0x49f   :  { %v845_v42 = vpop.xlane.xlu1 %844 }
 0x4a0   :  { %v846_v46 = vrot.slane %v845_v42, 4 }
 0x4a2   :  { %v847_v37 = vadd.f32 %v846_v46, %v845_v42 }
 0x4a4   :  { %v848_v44 = vrot.slane %v847_v37, 2 }
 0x4a6   :  { %v849_v39 = vadd.f32 %v848_v44, %v847_v37 }
 0x4a8   :  { %v850_v41 = vrot.slane %v849_v39, 1 }
 0x4aa   :  { %v851_v6 = vadd.f32 %v850_v41, %v849_v39 }
 0x4ac   :  { %1920 = vpush %v851_v6 }
 0x4dd   :  { %s1921_s17 = spop %1920 }
 0x4de   :  { %v853_v43 = vstv %s1921_s17 }
 0x4df   :  { %v854_v26 = vadd.f32 %v853_v43, %v757_v16 }
 0x4e1   :  { %856 = vst.msk [vmem:[#allocation9] sm:$0x1] %vm37_vm5, %v854_v26 }
 0x4e8   :  { %v1358_v49 = vld [vmem:[#allocation9] sm:$0x1] }
 0x4e9   :  { %v1362_v50 = vmul.f32 %v1947_v47, %v1358_v49 }
 0x4eb   :  { %1363 = vst.msk [vmem:[#allocation9] sm:$0x1] %vm37_vm5, %v1362_v50 }
 0x4ec   :  { %1959 = shalt.err (!%p1956_p4)
}
 0x4ed   :  { %s1960_s22 = scalar_lea.hbm %s2534_s6, 16 }
 0x4ee   :  { %p1961_p5 = scmp.ne.s32.totalorder %s2534_s6, %s1960_s22  ;;  %p1964_p6 = scmp.lt.u32.totalorder %s1960_s22, %s2534_s6 }
 0x4f0   :  { %p1966_p7 = pnand %p1964_p6, %p1961_p5 }
 0x4f2   :  { %1969 = shalt.err (!%p1966_p7)
}
 0x4f3   :  { %1383 = dma.vmem_to_hbm [thread:$0]  %s1381_s18, 16, %s2534_s6, [#allocation10]   ;;  %v1281_v52 = vpop.permute.xlu0 %1280 }
 0x4f4   :  { %s2003_s27 = smov [#allocation7]  }
 0x4f5   :  { %s1370_s28 = sshll.u32 %s2003_s27, 4  ;;  %s1371_s28 = int_to_ptr.vmem [resolvable:$true] %s1370_s28 }
 0x4f6   :  { %s1970_s29 = scalar_lea.vmem %s1371_s28, 64  ;;  %p1975_p9 = scmp.lt.s32.totalorder %s1371_s28, %s1371_s28 }
 0x4f7   :  { %p1971_p8 = scmp.ne.s32.totalorder %s1371_s28, %s1970_s29  ;;  %p1976_p10 = scmp.lt.s32.totalorder %s1970_s29, %s1970_s29 }
 0x4f9   :  { %p1977_p11 = por %p1976_p10, %p1975_p9 }
 0x4fb   :  { %p1978_p12 = pnand %p1977_p11, %p1971_p8 }
 0x548   :  { %v1353_v53 = vpop.f32.mrb[22].mxu0 }
 0x549   :  { %v1354_v55 = vadd.f32 %v1353_v53, %v1281_v52  ;;  %v1794_v56 = vpop.f32.mrb[23].mxu0 }
 0x54b   :  { %1357 = vst [vmem:[#allocation7] sm:$0xf] %v1354_v55 }
 0x54c   :  { %1981 = shalt.err (!%p1978_p12)
}
 0x54d   :  { %s1982_s8 = scalar_lea.hbm %s2533_s5, 64 }
 0x54e   :  { %p1983_p13 = scmp.ne.s32.totalorder %s2533_s5, %s1982_s8  ;;  %p1986_p0 = scmp.lt.u32.totalorder %s1982_s8, %s2533_s5 }
 0x550   :  { %p1988_p1 = pnand %p1986_p0, %p1983_p13 }
 0x552   :  { %1991 = shalt.err (!%p1988_p1)
}
 0x553   :  { %1373 = dma.vmem_to_hbm [thread:$0]  %s1371_s28, 64, %s2533_s5, [#allocation8]  }
 0x554   :  { %1992 = dma.done.wait [#allocation8], 64  }
 0x555   :  { %1993 = vsyncadd [#allocation8], 4294967232 }
 0x556   :  { %1994 = dma.done.wait [#allocation10], 16  }
 0x557   :  { %1995 = vsyncadd [#allocation10], 4294967280 }
 0x558   :  { %1390 = vsyncpa [#allocation8], 1 }
 0x559   :  { %1391 = vsyncpa [#allocation10], 1 }

</bundles_post_ra>
